<compile_context>
chip_gen: v7x
topology: tpu7x:2x2x1
jax: 0.10.0
libtpu: 0.0.40
codegen_flags: <defaults>
</compile_context>

<pallas_src>
import functools

import numpy as np
import jax
import jax.numpy as jnp
from jax import lax
from jax.experimental import pallas as pl
from jax.experimental.pallas import tpu as pltpu

LANE = 128


def _round_up(v, m):
    return -(-v // m) * m


def _masked_log_softmax(z, num_classes):
    """log_softmax over the first `num_classes` lanes of a (rows, 128) f32 tile."""
    lane = lax.broadcasted_iota(jnp.int32, z.shape, 1)
    valid = lane < num_classes
    zm = jnp.where(valid, z, jnp.float32(-1e30))
    m = jnp.max(zm, axis=1, keepdims=True)
    s = z - m
    p = jnp.where(valid, jnp.exp(s), 0.0)
    lse = jnp.log(jnp.sum(p, axis=1, keepdims=True))
    return jnp.where(valid, s - lse, 0.0)


# ----------------------------------------------------------------------------
# Fused path (small / medium graphs): one pallas_call, whole A resident in VMEM.
#   H = dropout(relu(A @ P + b1)),  P = X @ W1 (precomputed)
#   out = log_softmax(A @ (H @ W2) + b2)
# ----------------------------------------------------------------------------
def _fused_gcn_kernel(a_ref, p_ref, b1_ref, w2_ref, b2_ref, mask_ref, o_ref, *,
                      num_classes):
    a = a_ref[...]                                                   # bf16 (n_pad, n_pad)
    # Layer 1 (A-side matmul on the MXU, f32 accumulation).
    h = jnp.dot(a, p_ref[...], preferred_element_type=jnp.float32)
    h = jnp.maximum(h + b1_ref[...], 0.0)                            # bias + ReLU, f32
    h = h * mask_ref[...]                                            # dropout (ones in eval)
    # G = H @ W2 with bf16 MXU inputs.
    g = jnp.dot(h.astype(jnp.bfloat16), w2_ref[...],
                preferred_element_type=jnp.float32)
    # Layer 2 + masked log_softmax over the real class lanes.
    z = jnp.dot(a, g.astype(jnp.bfloat16),
                preferred_element_type=jnp.float32) + b2_ref[...]
    o_ref[...] = _masked_log_softmax(z, num_classes)                 # (n_pad, 128) lane-dense


# ----------------------------------------------------------------------------
# Tiled fallback (large graphs): two row-tiled pallas_calls with k-accumulation.
# ----------------------------------------------------------------------------
def _gcn_layer1_tiled_kernel(a_ref, p_ref, b1_ref, w2_ref, mask_ref, g_ref, acc_ref):
    k = pl.program_id(1)

    @pl.when(k == 0)
    def _init():
        acc_ref[...] = jnp.zeros_like(acc_ref)

    # acc += A[i, k] @ P[k, :]   (bf16 MXU inputs, f32 accumulation)
    acc_ref[...] += jnp.dot(a_ref[...], p_ref[...],
                            preferred_element_type=jnp.float32)

    @pl.when(k == pl.num_programs(1) - 1)
    def _finalize():
        h = jnp.maximum(acc_ref[...] + b1_ref[...], 0.0)             # bias + ReLU
        h = h * mask_ref[...]                                        # dropout
        g = jnp.dot(h.astype(jnp.bfloat16), w2_ref[...],
                    preferred_element_type=jnp.float32)              # G = H @ W2
        g_ref[...] = g.astype(g_ref.dtype)                           # bf16, lane-dense store


def _gcn_layer2_tiled_kernel(a_ref, g_ref, b2_ref, o_ref, acc_ref, *, num_classes):
    k = pl.program_id(1)

    @pl.when(k == 0)
    def _init():
        acc_ref[...] = jnp.zeros_like(acc_ref)

    acc_ref[...] += jnp.dot(a_ref[...], g_ref[...],
                            preferred_element_type=jnp.float32)

    @pl.when(k == pl.num_programs(1) - 1)
    def _finalize():
        z = acc_ref[...] + b2_ref[...]
        o_ref[...] = _masked_log_softmax(z, num_classes)             # (tm, 128) lane-dense


# ----------------------------------------------------------------------------
# Wrapper
# ----------------------------------------------------------------------------
def gnn_classifier_forward(x, a_hat, w1, b1, w2, b2, *,
                           training=False, dropout_p=0.5, dropout_mask=None, seed=0,
                           fused_max_n_pad=1024, tile_m=None, tile_k=None):
    """Forward pass of GNNClassifier.

    x: (N, F) f32 node features, a_hat: (N, N) f32 normalized adjacency.
    dropout_mask: optional (N, hidden) {0,1} keep mask (training mode); if None it is drawn
    from jax.random.PRNGKey(seed).  Returns (N, num_classes) f32 log-probabilities.
    """
    n, f = x.shape
    hdim = w1.shape[1]
    c = w2.shape[1]
    assert hdim <= LANE and c <= LANE, "hidden/class dims must fit one 128-lane tile"

    h_pad = LANE
    c_pad = LANE

    # P = X @ W1 once, in plain XLA (tiny: (N,F)@(F,H)); kernels only do A-side matmuls.
    p = jnp.dot(x.astype(jnp.float32), w1, preferred_element_type=jnp.float32)

    # Dropout scale mask built host-side (F.dropout, default p=0.5): {0, 1/(1-p)}.
    if training:
        if dropout_mask is None:
            dropout_mask = jax.random.bernoulli(
                jax.random.PRNGKey(seed), 1.0 - dropout_p, (n, hdim))
        mask = dropout_mask.astype(jnp.float32) * jnp.float32(1.0 / (1.0 - dropout_p))
    else:
        mask = jnp.ones((n, hdim), jnp.float32)

    # Small packed operands (biases f32, weight bf16 for the MXU).
    b1_row = jnp.zeros((1, h_pad), jnp.float32).at[0, :hdim].set(jnp.ravel(b1))
    b2_row = jnp.zeros((1, c_pad), jnp.float32).at[0, :c].set(jnp.ravel(b2))
    w2_p = jnp.zeros((h_pad, c_pad), jnp.bfloat16).at[:hdim, :c].set(
        w2.astype(jnp.bfloat16))

    def _pad_big(n_pad):
        a_p = jnp.pad(a_hat.astype(jnp.bfloat16), ((0, n_pad - n), (0, n_pad - n)))
        p_p = jnp.pad(p.astype(jnp.bfloat16), ((0, n_pad - n), (0, h_pad - hdim)))
        m_p = jnp.pad(mask, ((0, n_pad - n), (0, h_pad - hdim)))
        return a_p, p_p, m_p

    # ---------------- fused single-call path (small / medium N) ----------------
    n_pad_fused = _round_up(n, LANE)           # lane-dense A, bf16-sublane friendly
    if tile_m is None and tile_k is None and n_pad_fused <= fused_max_n_pad:
        a_p, p_p, m_p = _pad_big(n_pad_fused)
        out_full = pl.pallas_call(
            functools.partial(_fused_gcn_kernel, num_classes=c),
            out_shape=jax.ShapeDtypeStruct((n_pad_fused, c_pad), jnp.float32),
        )(a_p, p_p, b1_row, w2_p, b2_row, m_p)
        return out_full[:n, :c]

    # ---------------- tiled two-call fallback (large N) ----------------
    tm = tile_m if tile_m is not None else min(512, _round_up(n, 256))
    tk = tile_k if tile_k is not None else min(2048, _round_up(n, tm))
    tk = _round_up(tk, tm)                     # keep tk a multiple of tm
    assert tm % 8 == 0 and tk % 128 == 0
    n_pad = _round_up(n, tk)
    grid = (n_pad // tm, n_pad // tk)

    a_p, p_p, m_p = _pad_big(n_pad)
    cparams = pltpu.CompilerParams(
        dimension_semantics=("parallel", "arbitrary"),   # rows shard across cores
        vmem_limit_bytes=32 * 1024 * 1024)               # explicit cap, safe on v5e..v7x

    # Layer 1: G = (dropout(relu(A @ P + b1))) @ W2
    g_full = pl.pallas_call(
        _gcn_layer1_tiled_kernel,
        out_shape=jax.ShapeDtypeStruct((n_pad, c_pad), jnp.bfloat16),
        grid_spec=pltpu.PrefetchScalarGridSpec(
            num_scalar_prefetch=0,
            grid=grid,
            in_specs=[
                pl.BlockSpec((tm, tk), lambda i, k: (i, k)),          # A tile
                pl.BlockSpec((tk, h_pad), lambda i, k: (k, 0)),       # P rows k
                pl.BlockSpec((1, h_pad), lambda i, k: (0, 0)),        # b1
                pl.BlockSpec((h_pad, c_pad), lambda i, k: (0, 0)),    # W2 (bf16)
                pl.BlockSpec((tm, h_pad), lambda i, k: (i, 0)),       # dropout mask rows i
            ],
            out_specs=pl.BlockSpec((tm, c_pad), lambda i, k: (i, 0)),
            scratch_shapes=[pltpu.VMEM((tm, h_pad), jnp.float32)],
        ),
        compiler_params=cparams,
    )(a_p, p_p, b1_row, w2_p, m_p)

    # Layer 2: out = log_softmax(A @ G + b2)
    out_full = pl.pallas_call(
        functools.partial(_gcn_layer2_tiled_kernel, num_classes=c),
        out_shape=jax.ShapeDtypeStruct((n_pad, c_pad), jnp.float32),
        grid_spec=pltpu.PrefetchScalarGridSpec(
            num_scalar_prefetch=0,
            grid=grid,
            in_specs=[
                pl.BlockSpec((tm, tk), lambda i, k: (i, k)),          # A tile
                pl.BlockSpec((tk, c_pad), lambda i, k: (k, 0)),       # G rows k
                pl.BlockSpec((1, c_pad), lambda i, k: (0, 0)),        # b2
            ],
            out_specs=pl.BlockSpec((tm, c_pad), lambda i, k: (i, 0)),
            scratch_shapes=[pltpu.VMEM((tm, c_pad), jnp.float32)],
        ),
        compiler_params=cparams,
    )(a_p, g_full, b2_row)

    return out_full[:n, :c]


# ----------------------------------------------------------------------------
# JAX glue: adjacency normalization, init, reference
# ----------------------------------------------------------------------------
def gcn_normalized_adjacency(edge_index, num_nodes):
    """A_hat = D^-1/2 (A + I) D^-1/2 built from edge_index [2, E]."""
    src = jnp.asarray(edge_index[0], dtype=jnp.int32)
    dst = jnp.asarray(edge_index[1], dtype=jnp.int32)
    a = jnp.zeros((num_nodes, num_nodes), dtype=jnp.float32)
    a = a.at[dst, src].add(1.0)
    a = a + jnp.eye(num_nodes, dtype=jnp.float32)   # self loops (GCNConv default)
    deg = jnp.sum(a, axis=1)
    dinv = jax.lax.rsqrt(jnp.maximum(deg, 1e-12))
    return dinv[:, None] * a * dinv[None, :]


def glorot(key, shape):
    fan_in, fan_out = shape
    limit = float(np.sqrt(6.0 / (fan_in + fan_out)))
    return jax.random.uniform(key, shape, jnp.float32, minval=-limit, maxval=limit)


def reference_forward(x, a_hat, w1, b1, w2, b2, dropout_scale=None):
    """Pure-JAX reference mirroring the kernels' bf16-operand / f32-accumulate numerics."""
    a_bf = a_hat.astype(jnp.bfloat16)
    p_bf = jnp.dot(x, w1, preferred_element_type=jnp.float32).astype(jnp.bfloat16)
    h = jnp.maximum(jnp.dot(a_bf, p_bf, preferred_element_type=jnp.float32) + b1, 0.0)
    if dropout_scale is not None:
        h = h * dropout_scale
    g = jnp.dot(h.astype(jnp.bfloat16), w2.astype(jnp.bfloat16),
                preferred_element_type=jnp.float32)
    z = jnp.dot(a_bf, g.astype(jnp.bfloat16), preferred_element_type=jnp.float32) + b2
    return jax.nn.log_softmax(z, axis=1)


if __name__ == "__main__":
    # Shapes implied by the module: num_features=13, hidden_channels=32, num_classes=2.
    N, F, H, C = 8, 13, 32, 2

    key = jax.random.PRNGKey(0)
    kx, k1, k2, kx2, kmask = jax.random.split(key, 5)

    x = jax.random.normal(kx, (N, F), dtype=jnp.float32)
    # edge_index exactly as constructed in the original script (fully connected).
    edge_index = np.array(
        [[i for i in range(N) for j in range(N)],
         [j for j in range(N) for i in range(N)]], dtype=np.int64)
    a_hat = gcn_normalized_adjacency(edge_index, N)

    w1 = glorot(k1, (F, H))
    b1 = jnp.zeros((H,), dtype=jnp.float32)
    w2 = glorot(k2, (H, C))
    b2 = jnp.zeros((C,), dtype=jnp.float32)

    # (1) Eval mode at module scale — fused single-call path.
    out = jax.block_until_ready(
        gnn_classifier_forward(x, a_hat, w1, b1, w2, b2, training=False))
    ref = reference_forward(x, a_hat, w1, b1, w2, b2)
    np.testing.assert_allclose(np.asarray(out), np.asarray(ref), rtol=1e-3, atol=1e-3)

    # (2) Training mode (PyTorch default) with an explicit keep-mask so we can check exactly.
    keep = jax.random.bernoulli(kmask, 0.5, (N, H)).astype(jnp.float32)
    out_tr = jax.block_until_ready(
        gnn_classifier_forward(x, a_hat, w1, b1, w2, b2,
                               training=True, dropout_mask=keep))
    ref_tr = reference_forward(x, a_hat, w1, b1, w2, b2, dropout_scale=keep * 2.0)
    np.testing.assert_allclose(np.asarray(out_tr), np.asarray(ref_tr), rtol=1e-3, atol=1e-3)
    assert np.all(np.isfinite(np.asarray(out_tr)))

    # (3) Larger random graph (N=300) — still the fused path (n_pad=384, A fully resident).
    N2 = 300
    x2 = jax.random.normal(kx2, (N2, F), dtype=jnp.float32)
    rng = np.random.default_rng(0)
    adj = rng.random((N2, N2)) < 0.05
    src, dst = np.nonzero(adj)
    edge_index2 = np.stack([src, dst]).astype(np.int64)
    a_hat2 = gcn_normalized_adjacency(edge_index2, N2)
    out2 = jax.block_until_ready(
        gnn_classifier_forward(x2, a_hat2, w1, b1, w2, b2, training=False))
    ref2 = reference_forward(x2, a_hat2, w1, b1, w2, b2)
    np.testing.assert_allclose(np.asarray(out2), np.asarray(ref2), rtol=2e-3, atol=2e-3)

    # (4) Same graph forced onto the tiled two-kernel fallback (3x3 grid: row-parallel
    #     i axis + k-axis accumulation), validating the large-N path cheaply.
    out3 = jax.block_until_ready(
        gnn_classifier_forward(x2, a_hat2, w1, b1, w2, b2, training=False,
                               fused_max_n_pad=0, tile_m=128, tile_k=128))
    np.testing.assert_allclose(np.asarray(out3), np.asarray(ref2), rtol=2e-3, atol=2e-3)

    print("KERNEL_OK")
</pallas_src>

<mosaic_0001>
module attributes {stable_mosaic.version = 11 : i64} {
  func.func @_fused_gcn_kernel(%arg0: memref<128x128xbf16, #tpu.memory_space<vmem>>, %arg1: memref<128x128xbf16, #tpu.memory_space<vmem>>, %arg2: memref<1x128xf32, #tpu.memory_space<vmem>>, %arg3: memref<128x128xbf16, #tpu.memory_space<vmem>>, %arg4: memref<1x128xf32, #tpu.memory_space<vmem>>, %arg5: memref<128x128xf32, #tpu.memory_space<vmem>>, %arg6: memref<128x128xf32, #tpu.memory_space<vmem>>) attributes {dimension_semantics = [], scalar_prefetch = 0 : i64, scratch_operands = 0 : i64, tpu.core_type = #tpu.core_type<tc>} {
    %c0 = arith.constant 0 : index
    %c0_0 = arith.constant 0 : index
    %0 = vector.load %arg0[%c0, %c0_0] : memref<128x128xbf16, #tpu.memory_space<vmem>>, vector<128x128xbf16>
    %c0_1 = arith.constant 0 : index
    %c0_2 = arith.constant 0 : index
    %1 = vector.load %arg1[%c0_1, %c0_2] : memref<128x128xbf16, #tpu.memory_space<vmem>>, vector<128x128xbf16>
    %cst = arith.constant dense<0.000000e+00> : vector<128x128xf32>
    %2 = tpu.matmul %0, %1, %cst {dimension_numbers = #tpu.dot_dimension_numbers<[1], [0], [0], [1], [0, 0, 1, 1], [], []>} : vector<128x128xbf16>, vector<128x128xbf16>, vector<128x128xf32> -> vector<128x128xf32>
    %c0_3 = arith.constant 0 : index
    %c0_4 = arith.constant 0 : index
    %3 = vector.load %arg2[%c0_3, %c0_4] : memref<1x128xf32, #tpu.memory_space<vmem>>, vector<1x128xf32>
    %4 = vector.broadcast %3 : vector<1x128xf32> to vector<128x128xf32>
    %5 = arith.addf %2, %4 : vector<128x128xf32>
    %cst_5 = arith.constant 0.000000e+00 : f32
    %6 = vector.broadcast %cst_5 : f32 to vector<128x128xf32>
    %7 = arith.maximumf %5, %6 : vector<128x128xf32>
    %c0_6 = arith.constant 0 : index
    %c0_7 = arith.constant 0 : index
    %8 = vector.load %arg5[%c0_6, %c0_7] : memref<128x128xf32, #tpu.memory_space<vmem>>, vector<128x128xf32>
    %9 = arith.mulf %7, %8 : vector<128x128xf32>
    %10 = arith.truncf %9 : vector<128x128xf32> to vector<128x128xbf16>
    %c0_8 = arith.constant 0 : index
    %c0_9 = arith.constant 0 : index
    %11 = vector.load %arg3[%c0_8, %c0_9] : memref<128x128xbf16, #tpu.memory_space<vmem>>, vector<128x128xbf16>
    %cst_10 = arith.constant dense<0.000000e+00> : vector<128x128xf32>
    %12 = tpu.matmul %10, %11, %cst_10 {dimension_numbers = #tpu.dot_dimension_numbers<[1], [0], [0], [1], [0, 0, 1, 1], [], []>} : vector<128x128xbf16>, vector<128x128xbf16>, vector<128x128xf32> -> vector<128x128xf32>
    %13 = arith.truncf %12 : vector<128x128xf32> to vector<128x128xbf16>
    %cst_11 = arith.constant dense<0.000000e+00> : vector<128x128xf32>
    %14 = tpu.matmul %0, %13, %cst_11 {dimension_numbers = #tpu.dot_dimension_numbers<[1], [0], [0], [1], [0, 0, 1, 1], [], []>} : vector<128x128xbf16>, vector<128x128xbf16>, vector<128x128xf32> -> vector<128x128xf32>
    %c0_12 = arith.constant 0 : index
    %c0_13 = arith.constant 0 : index
    %15 = vector.load %arg4[%c0_12, %c0_13] : memref<1x128xf32, #tpu.memory_space<vmem>>, vector<1x128xf32>
    %16 = vector.broadcast %15 : vector<1x128xf32> to vector<128x128xf32>
    %17 = arith.addf %14, %16 : vector<128x128xf32>
    %18 = tpu.iota {dimensions = array<i32: 1>} : vector<128x128xi32>
    %c2_i32 = arith.constant 2 : i32
    %19 = vector.broadcast %c2_i32 : i32 to vector<128x128xi32>
    %20 = arith.cmpi slt, %18, %19 : vector<128x128xi32>
    %cst_14 = arith.constant -1.000000e+30 : f32
    %21 = vector.broadcast %cst_14 : f32 to vector<128x128xf32>
    %22 = arith.select %20, %17, %21 : vector<128x128xi1>, vector<128x128xf32>
    %cst_15 = arith.constant dense<0xFF800000> : vector<128xf32>
    %23 = vector.multi_reduction <maximumf>, %22, %cst_15 [1] : vector<128x128xf32> to vector<128xf32>
    %24 = vector.shape_cast %23 : vector<128xf32> to vector<128x1xf32>
    %25 = vector.broadcast %24 : vector<128x1xf32> to vector<128x128xf32>
    %26 = arith.subf %17, %25 : vector<128x128xf32>
    %27 = math.exp %26 : vector<128x128xf32>
    %cst_16 = arith.constant 0.000000e+00 : f32
    %28 = vector.broadcast %cst_16 : f32 to vector<128x128xf32>
    %29 = arith.select %20, %27, %28 : vector<128x128xi1>, vector<128x128xf32>
    %cst_17 = arith.constant dense<0.000000e+00> : vector<128xf32>
    %30 = vector.multi_reduction <add>, %29, %cst_17 [1] : vector<128x128xf32> to vector<128xf32>
    %31 = vector.shape_cast %30 : vector<128xf32> to vector<128x1xf32>
    %32 = math.log %31 : vector<128x1xf32>
    %33 = vector.broadcast %32 : vector<128x1xf32> to vector<128x128xf32>
    %34 = arith.subf %26, %33 : vector<128x128xf32>
    %cst_18 = arith.constant 0.000000e+00 : f32
    %35 = vector.broadcast %cst_18 : f32 to vector<128x128xf32>
    %36 = arith.select %20, %34, %35 : vector<128x128xi1>, vector<128x128xf32>
    %c0_19 = arith.constant 0 : index
    %c0_20 = arith.constant 0 : index
    %37 = vector.load %arg6[%c0_19, %c0_20] : memref<128x128xf32, #tpu.memory_space<vmem>>, vector<128x128xf32>
    tpu.vector_store %arg6[%c0_19, %c0_20], %36 {strides = array<i32>} : memref<128x128xf32, #tpu.memory_space<vmem>>, vector<128x128xf32>,
    return
  }
}

</mosaic_0001>

<bundles_post_ra>
// kernel: tpu_custom_call.1
= control target key start
LH: loop header
LB: loop body
LE: loop exit
PB: predicated region body
PF: predicated region fallthrough
CT: control target
= control target key end

     0   :  { %11 = vsyncpa [#allocation3], 0  ;;  %s1684_s0 = inlined_call_operand.hbm [shape: bf16[128,128], index: 0, kind: input, shape index: {}]   ;;  %s1685_s1 = inlined_call_operand.hbm [shape: bf16[128,128], index: 1, kind: input, shape index: {}]   ;;  %s1686_s2 = inlined_call_operand.vmem [shape: f32[1,128], index: 2, kind: input, shape index: {}]   ;;  %s1687_s3 = inlined_call_operand.hbm [shape: bf16[128,128], index: 3, kind: input, shape index: {}]   ;;  %s1688_s4 = inlined_call_operand.vmem [shape: f32[1,128], index: 4, kind: input, shape index: {}]   ;;  %s1689_s5 = inlined_call_operand.hbm [shape: f32[128,128], index: 5, kind: input, shape index: {}]   ;;  %s1690_s6 = inlined_call_operand.hbm [shape: f32[128,128], index: 6, kind: output, shape index: {}]  }
   0x1   :  { %12 = vsyncpa [#allocation6], 0 }
   0x2   :  { %13 = vsyncpa [#allocation9], 0 }
   0x3   :  { %14 = vsyncpa [#allocation4], 0  ;;  %s1288_s21 = smov [#allocation5]   ;;  %s1289_s23 = smov [#allocation2]  }
   0x4   :  { %s32_s22 = sshll.u32 %s1288_s21, 4  ;;  %s20_s24 = sshll.u32 %s1289_s23, 4  ;;  %s33_s22 = int_to_ptr.vmem [resolvable:$true] %s32_s22  ;;  %s1332_s24 = int_to_ptr.vmem [resolvable:$true] %s20_s24 }
   0x5   :  { %s1170_s27 = scalar_lea.hbm %s1685_s1, 1024 }
   0x6   :  { %p1171_p0 = scmp.ne.s32.totalorder %s1685_s1, %s1170_s27  ;;  %p1174_p1 = scmp.lt.u32.totalorder %s1170_s27, %s1685_s1 }
   0x8   :  { %p1176_p2 = pnand %p1174_p1, %p1171_p0 }
   0xa   :  { %1179 = shalt.err (!%p1176_p2)
}
   0xb   :  { %s1180_s8 = scalar_lea.vmem %s33_s22, 1024  ;;  %p1185_p4 = scmp.lt.s32.totalorder %s33_s22, %s33_s22 }
   0xc   :  { %p1181_p3 = scmp.ne.s32.totalorder %s33_s22, %s1180_s8  ;;  %p1186_p5 = scmp.lt.s32.totalorder %s1180_s8, %s1180_s8 }
   0xe   :  { %p1187_p6 = por %p1186_p5, %p1185_p4 }
  0x10   :  { %p1188_p7 = pnand %p1187_p6, %p1181_p3 }
  0x12   :  { %1191 = shalt.err (!%p1188_p7)
}
  0x13   :  { %s1290_s9 = smov 64   ;;  %s1291_s10 = smov 4  }
  0x14   :  { %38 = dma.hbm_to_vmem [thread:$0]  %s1685_s1, 1024, %s33_s22, [#allocation6], %s1290_s9, %s1290_s9, %s1291_s10  }
  0x15   :  { %s1192_s15 = scalar_lea.hbm %s1684_s0, 1024 }
  0x16   :  { %p1193_p8 = scmp.ne.s32.totalorder %s1684_s0, %s1192_s15  ;;  %p1196_p9 = scmp.lt.u32.totalorder %s1192_s15, %s1684_s0 }
  0x18   :  { %p1198_p10 = pnand %p1196_p9, %p1193_p8 }
  0x1a   :  { %1201 = shalt.err (!%p1198_p10)
}
  0x1b   :  { %s1202_s20 = scalar_lea.vmem %s1332_s24, 1024  ;;  %p1207_p12 = scmp.lt.s32.totalorder %s1332_s24, %s1332_s24 }
  0x1c   :  { %p1203_p11 = scmp.ne.s32.totalorder %s1332_s24, %s1202_s20  ;;  %p1208_p13 = scmp.lt.s32.totalorder %s1202_s20, %s1202_s20 }
  0x1e   :  { %p1209_p0 = por %p1208_p13, %p1207_p12 }
  0x20   :  { %p1210_p1 = pnand %p1209_p0, %p1203_p11 }
  0x22   :  { %1213 = shalt.err (!%p1210_p1)
}
  0x23   :  { %26 = dma.hbm_to_vmem [thread:$0]  %s1684_s0, 1024, %s1332_s24, [#allocation3], %s1290_s9, %s1290_s9, %s1291_s10  }
  0x24   :  { %s1292_s22 = smov [#allocation7]   ;;  %s1293_s25 = smov [#allocation8]  }
  0x25   :  { %s46_s23 = sshll.u32 %s1292_s22, 4  ;;  %s60_s26 = sshll.u32 %s1293_s25, 4  ;;  %s47_s23 = int_to_ptr.vmem [resolvable:$true] %s46_s23  ;;  %s1369_s26 = int_to_ptr.vmem [resolvable:$true] %s60_s26 }
  0x26   :  { %s1214_s29 = scalar_lea.hbm %s1687_s3, 1024 }
  0x27   :  { %p1215_p2 = scmp.ne.s32.totalorder %s1687_s3, %s1214_s29  ;;  %p1218_p3 = scmp.lt.u32.totalorder %s1214_s29, %s1687_s3 }
  0x29   :  { %p1220_p4 = pnand %p1218_p3, %p1215_p2 }
  0x2b   :  { %1223 = shalt.err (!%p1220_p4)
}
  0x2c   :  { %s1224_s0 = scalar_lea.vmem %s47_s23, 1024  ;;  %p1229_p6 = scmp.lt.s32.totalorder %s47_s23, %s47_s23 }
  0x2d   :  { %p1225_p5 = scmp.ne.s32.totalorder %s47_s23, %s1224_s0  ;;  %p1230_p7 = scmp.lt.s32.totalorder %s1224_s0, %s1224_s0 }
  0x2f   :  { %p1231_p8 = por %p1230_p7, %p1229_p6 }
  0x31   :  { %p1232_p9 = pnand %p1231_p8, %p1225_p5 }
  0x33   :  { %1235 = shalt.err (!%p1232_p9)
}
  0x34   :  { %52 = dma.hbm_to_vmem [thread:$0]  %s1687_s3, 1024, %s47_s23, [#allocation6], %s1290_s9, %s1290_s9, %s1291_s10  }
  0x35   :  { %s1236_s15 = scalar_lea.hbm %s1689_s5, 2048 }
  0x36   :  { %p1237_p10 = scmp.ne.s32.totalorder %s1689_s5, %s1236_s15  ;;  %p1240_p11 = scmp.lt.u32.totalorder %s1236_s15, %s1689_s5 }
  0x38   :  { %p1242_p12 = pnand %p1240_p11, %p1237_p10 }
  0x3a   :  { %1245 = shalt.err (!%p1242_p12)
}
  0x3b   :  { %s1246_s20 = scalar_lea.vmem %s1369_s26, 2048  ;;  %p1251_p0 = scmp.lt.s32.totalorder %s1369_s26, %s1369_s26 }
  0x3c   :  { %p1247_p13 = scmp.ne.s32.totalorder %s1369_s26, %s1246_s20  ;;  %p1252_p1 = scmp.lt.s32.totalorder %s1246_s20, %s1246_s20 }
  0x3e   :  { %p1253_p2 = por %p1252_p1, %p1251_p0 }
  0x40   :  { %p1254_p3 = pnand %p1253_p2, %p1247_p13 }
  0x42   :  { %1257 = shalt.err (!%p1254_p3)
}
  0x43   :  { %s1294_s3 = smov 128   ;;  %s1295_s9 = smov 8  }
  0x44   :  { %66 = dma.hbm_to_vmem [thread:$0]  %s1689_s5, 2048, %s1369_s26, [#allocation9], %s1294_s3, %s1294_s3, %s1295_s9  }
  0x45   :  { %1280 = dma.done.wait [#allocation3], 1024  }
  0x46   :  { %1281 = vsyncadd [#allocation3], 4294966272 }
  0x47   :  { %1282 = dma.done.wait [#allocation6], 2048  }
  0x48   :  { %1283 = vsyncadd [#allocation6], 4294965248 }
  0x49   :  { %1284 = dma.done.wait [#allocation9], 2048  }
  0x4a   :  { %1285 = vsyncadd [#allocation9], 4294965248  ;;  %v1082_v0 = vld [vmem:[#allocation5] sm:$0xff]   ;;  %v1083_v1 = vld [vmem:[#allocation5 + $0x8] sm:$0xff]  }
  0x4b   :  { %961 = vmatprep.subr.bf16.mxu0 %v1082_v0  ;;  %v1084_v2 = vld [vmem:[#allocation5 + $0x10] sm:$0xff]   ;;  %v1085_v3 = vld [vmem:[#allocation5 + $0x18] sm:$0xff]   ;;  %v1090_v4 = vld [vmem:[#allocation2] sm:$0xff]  }
  0x4c   :  { %962 = vmatpush3.bf16.msra.mxu0 %v1082_v0  ;;  %977 = vmatprep.mubr.bf16.mxu0 %v1090_v4  ;;  %v1086_v5 = vld [vmem:[#allocation5 + $0x20] sm:$0xff]   ;;  %v1087_v6 = vld [vmem:[#allocation5 + $0x28] sm:$0xff]   ;;  %v1088_v9 = vld [vmem:[#allocation5 + $0x30] sm:$0xff]  }
  0x4d   :  { %963 = vmatprep.subr.bf16.mxu0 %v1083_v1  ;;  %v1098_v7 = vld [vmem:[#allocation7] sm:$0xff]   ;;  %v1099_v8 = vld [vmem:[#allocation7 + $0x8] sm:$0xff]   ;;  %v1100_v10 = vld [vmem:[#allocation7 + $0x10] sm:$0xff]  }
  0x4e   :  { %993 = vmatprep.subr.bf16.mxu1 %v1098_v7  ;;  %v1089_v11 = vld [vmem:[#allocation5 + $0x38] sm:$0xff]   ;;  %v1102_v13 = vld [vmem:[#allocation7 + $0x20] sm:$0xff]   ;;  %v1406_v14 = vld [vmem:[#allocation2 + $0x8] sm:$0xff]  }
  0x4f   :  { %994 = vmatpush3.bf16.msra.mxu1 %v1098_v7  ;;  %v1101_v12 = vld [vmem:[#allocation7 + $0x18] sm:$0xff]   ;;  %v1408_v15 = vld [vmem:[#allocation2 + $0x10] sm:$0xff]   ;;  %v1414_v17 = vld [vmem:[#allocation2 + $0x20] sm:$0xff]  }
  0x50   :  { %964 = vmatpush3.bf16.msra.mxu0 %v1083_v1  ;;  %995 = vmatprep.subr.bf16.mxu1 %v1099_v8  ;;  %v1412_v16 = vld [vmem:[#allocation2 + $0x18] sm:$0xff]   ;;  %v1418_v18 = vld [vmem:[#allocation2 + $0x28] sm:$0xff]   ;;  %v1420_v19 = vld [vmem:[#allocation2 + $0x30] sm:$0xff]  }
  0x51   :  { %965 = vmatprep.subr.bf16.mxu0 %v1084_v2  ;;  %v1424_v20 = vld [vmem:[#allocation2 + $0x38] sm:$0xff]   ;;  %v1103_v21 = vld [vmem:[#allocation7 + $0x28] sm:$0xff]   ;;  %v1104_v22 = vld [vmem:[#allocation7 + $0x30] sm:$0xff]  }
  0x52   :  { %v1105_v23 = vld [vmem:[#allocation7 + $0x38] sm:$0xff]   ;;  %v1430_v24 = vld [vmem:[%s1686_s2] ss:$0 sm:$0xff]  ;;  %v330_v33 = vld [vmem:[#allocation8 + $0x10] sm:$0xff] }
  0x53   :  { %996 = vmatpush3.bf16.msra.mxu1 %v1099_v8  ;;  %v331_v35 = vld [vmem:[#allocation8 + $0x18] sm:$0xff]  ;;  %v328_v38 = vld [vmem:[#allocation8] sm:$0xff]  ;;  %v329_v39 = vld [vmem:[#allocation8 + $0x8] sm:$0xff] }
  0x54   :  { %966 = vmatpush3.bf16.msra.mxu0 %v1084_v2  ;;  %997 = vmatprep.subr.bf16.mxu1 %v1100_v10  ;;  %v334_v55 = vld [vmem:[#allocation8 + $0x30] sm:$0xff]  ;;  %v335_v57 = vld [vmem:[#allocation8 + $0x38] sm:$0xff]  ;;  %v332_v59 = vld [vmem:[#allocation8 + $0x20] sm:$0xff] }
  0x55   :  { %967 = vmatprep.subr.bf16.mxu0 %v1085_v3  ;;  %v333_v61 = vld [vmem:[#allocation8 + $0x28] sm:$0xff] }
  0x57   :  { %998 = vmatpush3.bf16.msra.mxu1 %v1100_v10 }
  0x58   :  { %968 = vmatpush3.bf16.msra.mxu0 %v1085_v3  ;;  %999 = vmatprep.subr.bf16.mxu1 %v1101_v12 }
  0x59   :  { %969 = vmatprep.subr.bf16.mxu0 %v1086_v5 }
  0x5b   :  { %1000 = vmatpush3.bf16.msra.mxu1 %v1101_v12 }
  0x5c   :  { %970 = vmatpush3.bf16.msra.mxu0 %v1086_v5  ;;  %1001 = vmatprep.subr.bf16.mxu1 %v1102_v13 }
  0x5d   :  { %971 = vmatprep.subr.bf16.mxu0 %v1087_v6 }
  0x5f   :  { %1002 = vmatpush3.bf16.msra.mxu1 %v1102_v13  ;;  %v338_v13 = vld [vmem:[#allocation8 + $0x50] sm:$0xff] }
  0x60   :  { %972 = vmatpush3.bf16.msra.mxu0 %v1087_v6  ;;  %1003 = vmatprep.subr.bf16.mxu1 %v1103_v21 }
  0x61   :  { %973 = vmatprep.subr.bf16.mxu0 %v1088_v9 }
  0x63   :  { %1004 = vmatpush3.bf16.msra.mxu1 %v1103_v21 }
  0x64   :  { %974 = vmatpush3.bf16.msra.mxu0 %v1088_v9  ;;  %1005 = vmatprep.subr.bf16.mxu1 %v1104_v22 }
  0x65   :  { %975 = vmatprep.subr.bf16.mxu0 %v1089_v11 }
  0x67   :  { %1006 = vmatpush3.bf16.msra.mxu1 %v1104_v22  ;;  %v339_v22 = vld [vmem:[#allocation8 + $0x58] sm:$0xff] }
  0x68   :  { %976 = vmatpush3.bf16.msra.mxu0 %v1089_v11  ;;  %1007 = vmatprep.subr.bf16.mxu1 %v1105_v23 }
  0x6b   :  { %978 = vmatmul.mubr.bf16.vlgmr.msra.gmra.mrb[0].mxu0 %v1406_v14  ;;  %1008 = vmatpush3.bf16.msra.mxu1 %v1105_v23 }
  0x6c   :  { %981 = vmatprep.mubr.bf16.mxu0 %v1408_v15 }
  0x73   :  { %982 = vmatmul.mubr.bf16.gmra.mrb[4].mxu0 %v1412_v16 }
  0x74   :  { %985 = vmatprep.mubr.bf16.mxu0 %v1414_v17 }
  0x7b   :  { %986 = vmatmul.mubr.bf16.gmra.mrb[8].mxu0 %v1418_v18 }
  0x7c   :  { %989 = vmatprep.mubr.bf16.mxu0 %v1420_v19 }
  0x83   :  { %990 = vmatmul.mubr.bf16.gmra.mrb[12].mxu0 %v1424_v20 }
  0x84   :  { %1041 = vmatprep.mubr.bf16.mxu0 %v1090_v4 }
 0x13e   :  { %v979_v25 = vpop.f32.mrb[0].mxu0 }
 0x13f   :  { %v258_v26 = vadd.f32 %v979_v25, %v1430_v24  ;;  %v249_v27 = vpop.f32.mrb[1].mxu0  ;;  %v336_v25 = vld [vmem:[#allocation8 + $0x40] sm:$0xff] }
 0x140   :  { %v250_v28 = vadd.f32 %v1430_v24, %v249_v27  ;;  %v980_v29 = vpop.f32.mrb[2].mxu0  ;;  %v337_v27 = vld [vmem:[#allocation8 + $0x48] sm:$0xff] }
 0x141   :  { %v314_v30 = vmax.f32 %v258_v26, 0.0  ;;  %v261_v31 = vadd.f32 %v980_v29, %v1430_v24  ;;  %v252_v32 = vpop.f32.mrb[3].mxu0 }
 0x142   :  { %v312_v34 = vmax.f32 %v250_v28, 0.0  ;;  %v253_v36 = vadd.f32 %v1430_v24, %v252_v32 }
 0x143   :  { %v315_v37 = vmax.f32 %v261_v31, 0.0  ;;  %v346_v41 = vmul.f32 %v330_v33, %v314_v30 }
 0x144   :  { %v313_v40 = vmax.f32 %v253_v36, 0.0  ;;  %v344_v44 = vmul.f32 %v328_v38, %v312_v34 }
 0x145   :  { %v347_v42 = vmul.f32 %v331_v35, %v315_v37 }
 0x146   :  { %v983_v43 = vpop.f32.mrb[4].mxu0  ;;  %v345_v45 = vmul.f32 %v329_v39, %v313_v40 }
 0x147   :  { %v274_v46 = vadd.f32 %v983_v43, %v1430_v24  ;;  %v265_v47 = vpop.f32.mrb[5].mxu0  ;;  %v361_v48 = vpack.c.bf16 %v347_v42, %v346_v41  ;;  %v342_v43 = vld [vmem:[#allocation8 + $0x70] sm:$0xff] }
 0x148   :  { %v266_v49 = vadd.f32 %v1430_v24, %v265_v47  ;;  %v984_v50 = vpop.f32.mrb[6].mxu0  ;;  %v360_v51 = vpack.c.bf16 %v345_v45, %v344_v44  ;;  %v343_v45 = vld [vmem:[#allocation8 + $0x78] sm:$0xff]  ;;  %v340_v47 = vld [vmem:[#allocation8 + $0x60] sm:$0xff] }
 0x149   :  { %v318_v52 = vmax.f32 %v274_v46, 0.0  ;;  %v277_v53 = vadd.f32 %v984_v50, %v1430_v24  ;;  %v268_v54 = vpop.f32.mrb[7].mxu0 }
 0x14a   :  { %v316_v56 = vmax.f32 %v266_v49, 0.0  ;;  %v269_v58 = vadd.f32 %v1430_v24, %v268_v54  ;;  %1009 = vmatprep.mubr.bf16.mxu1 %v360_v51  ;;  %v341_v49 = vld [vmem:[#allocation8 + $0x68] sm:$0xff] }
 0x14b   :  { %v319_v60 = vmax.f32 %v277_v53, 0.0  ;;  %1010 = vmatmul.mubr.bf16.vlgmr.msra.gmra.mrb[0].mxu1 %v361_v48  ;;  %v350_v63 = vmul.f32 %v334_v55, %v318_v52 }
 0x14c   :  { %v317_v62 = vmax.f32 %v269_v58, 0.0  ;;  %v348_v1 = vmul.f32 %v332_v59, %v316_v56 }
 0x14d   :  { %v351_v0 = vmul.f32 %v335_v57, %v319_v60 }
 0x14e   :  { %v349_v2 = vmul.f32 %v333_v61, %v317_v62  ;;  %v987_v3 = vpop.f32.mrb[8].mxu0 }
 0x14f   :  { %v290_v4 = vadd.f32 %v987_v3, %v1430_v24  ;;  %v281_v5 = vpop.f32.mrb[9].mxu0  ;;  %v363_v6 = vpack.c.bf16 %v351_v0, %v350_v63 }
 0x150   :  { %v282_v7 = vadd.f32 %v1430_v24, %v281_v5  ;;  %v988_v8 = vpop.f32.mrb[10].mxu0  ;;  %v362_v9 = vpack.c.bf16 %v349_v2, %v348_v1 }
 0x151   :  { %v322_v10 = vmax.f32 %v290_v4, 0.0  ;;  %v293_v11 = vadd.f32 %v988_v8, %v1430_v24  ;;  %v284_v12 = vpop.f32.mrb[11].mxu0 }
 0x152   :  { %v320_v21 = vmax.f32 %v282_v7, 0.0  ;;  %v285_v23 = vadd.f32 %v1430_v24, %v284_v12  ;;  %1013 = vmatprep.mubr.bf16.mxu1 %v362_v9 }
 0x153   :  { %v323_v26 = vmax.f32 %v293_v11, 0.0  ;;  %1014 = vmatmul.mubr.bf16.gmra.mrb[4].mxu1 %v363_v6  ;;  %v354_v29 = vmul.f32 %v338_v13, %v322_v10 }
 0x154   :  { %v321_v28 = vmax.f32 %v285_v23, 0.0  ;;  %v352_v31 = vmul.f32 %v336_v25, %v320_v21  ;;  %v912_v25 = vld [vmem:[%s1688_s4] ss:$0 sm:$0xff]  ;;  %s1296_s4 = smov [#allocation10]  }
 0x155   :  { %v355_v30 = vmul.f32 %v339_v22, %v323_v26  ;;  %v641_v22 = vlaneseq  ;;  %s873_s23 = sshll.u32 %s1296_s4, 4  ;;  %s874_s23 = int_to_ptr.vmem [resolvable:$true] %s873_s23 }
 0x156   :  { %v353_v32 = vmul.f32 %v337_v27, %v321_v28  ;;  %v991_v33 = vpop.f32.mrb[12].mxu0  ;;  %s1258_s25 = scalar_lea.vmem %s874_s23, 2048  ;;  %p1263_p5 = scmp.lt.s32.totalorder %s874_s23, %s874_s23 }
 0x157   :  { %v306_v34 = vadd.f32 %v991_v33, %v1430_v24  ;;  %v297_v35 = vpop.f32.mrb[13].mxu0  ;;  %v365_v36 = vpack.c.bf16 %v355_v30, %v354_v29  ;;  %v1455_v23 = vand.u32 127, %v641_v22  ;;  %p1259_p4 = scmp.ne.s32.totalorder %s874_s23, %s1258_s25  ;;  %p1264_p6 = scmp.lt.s32.totalorder %s1258_s25, %s1258_s25 }
 0x158   :  { %v298_v37 = vadd.f32 %v1430_v24, %v297_v35  ;;  %v992_v38 = vpop.f32.mrb[14].mxu0  ;;  %v364_v39 = vpack.c.bf16 %v353_v32, %v352_v31 }
 0x159   :  { %v326_v40 = vmax.f32 %v306_v34, 0.0  ;;  %v309_v41 = vadd.f32 %v992_v38, %v1430_v24  ;;  %v300_v42 = vpop.f32.mrb[15].mxu0  ;;  %vm643_vm0 = vcmp.lt.s32.totalorder %v1455_v23, 2  ;;  %p1265_p7 = por %p1264_p6, %p1263_p5 }
 0x15a   :  { %v324_v44 = vmax.f32 %v298_v37, 0.0  ;;  %v301_v46 = vadd.f32 %v1430_v24, %v300_v42  ;;  %1017 = vmatprep.mubr.bf16.mxu1 %v364_v39 }
 0x15b   :  { %v327_v48 = vmax.f32 %v309_v41, 0.0  ;;  %1018 = vmatmul.mubr.bf16.gmra.mrb[8].mxu1 %v365_v36  ;;  %v358_v51 = vmul.f32 %v342_v43, %v326_v40  ;;  %p1266_p8 = pnand %p1265_p7, %p1259_p4 }
 0x15c   :  { %v325_v50 = vmax.f32 %v301_v46, 0.0  ;;  %v356_v53 = vmul.f32 %v340_v47, %v324_v44 }
 0x15d   :  { %v359_v52 = vmul.f32 %v343_v45, %v327_v48 }
 0x15e   :  { %v357_v54 = vmul.f32 %v341_v49, %v325_v50 }
 0x15f   :  { %v367_v55 = vpack.c.bf16 %v359_v52, %v358_v51 }
 0x160   :  { %v366_v56 = vpack.c.bf16 %v357_v54, %v356_v53 }
 0x162   :  { %1021 = vmatprep.mubr.bf16.mxu1 %v366_v56 }
 0x163   :  { %1022 = vmatmul.mubr.bf16.gmra.mrb[12].mxu1 %v367_v55 }
 0x164   :  { %1049 = vmatprep.mubr.bf16.mxu1 %v1414_v17 }
 0x21e   :  { %v1011_v57 = vpop.f32.mrb[0].mxu1 }
 0x21f   :  { %v466_v58 = vpop.f32.mrb[1].mxu1 }
 0x220   :  { %v1012_v59 = vpop.f32.mrb[2].mxu1 }
 0x221   :  { %v530_v24 = vpack.c.bf16 %v1012_v59, %v1011_v57  ;;  %v469_v60 = vpop.f32.mrb[3].mxu1 }
 0x222   :  { %v529_v61 = vpack.c.bf16 %v469_v60, %v466_v58 }
 0x224   :  { %1025 = vmatprep.subr.bf16.mxu0 %v529_v61  ;;  %1057 = vmatprep.subr.bf16.mxu1 %v529_v61 }
 0x225   :  { %1026 = vmatpush3.bf16.msra.mxu0 %v529_v61  ;;  %1065 = vmatpush3.bf16.msra.mxu1 %v529_v61 }
 0x226   :  { %v1015_v62 = vpop.f32.mrb[4].mxu1  ;;  %1027 = vmatprep.subr.bf16.mxu0 %v530_v24  ;;  %1058 = vmatprep.subr.bf16.mxu1 %v530_v24 }
 0x227   :  { %v482_v63 = vpop.f32.mrb[5].mxu1 }
 0x228   :  { %v1016_v0 = vpop.f32.mrb[6].mxu1 }
 0x229   :  { %v532_v1 = vpack.c.bf16 %v1016_v0, %v1015_v62  ;;  %v485_v2 = vpop.f32.mrb[7].mxu1  ;;  %1028 = vmatpush3.bf16.msra.mxu0 %v530_v24  ;;  %1066 = vmatpush3.bf16.msra.mxu1 %v530_v24 }
 0x22a   :  { %v531_v17 = vpack.c.bf16 %v485_v2, %v482_v63 }
 0x22c   :  { %1029 = vmatprep.subr.bf16.mxu0 %v531_v17  ;;  %1059 = vmatprep.subr.bf16.mxu1 %v531_v17 }
 0x22d   :  { %1030 = vmatpush3.bf16.msra.mxu0 %v531_v17  ;;  %1067 = vmatpush3.bf16.msra.mxu1 %v531_v17 }
 0x22e   :  { %v1019_v3 = vpop.f32.mrb[8].mxu1  ;;  %1031 = vmatprep.subr.bf16.mxu0 %v532_v1  ;;  %1060 = vmatprep.subr.bf16.mxu1 %v532_v1 }
 0x22f   :  { %v498_v4 = vpop.f32.mrb[9].mxu1 }
 0x230   :  { %v1020_v5 = vpop.f32.mrb[10].mxu1 }
 0x231   :  { %v534_v6 = vpack.c.bf16 %v1020_v5, %v1019_v3  ;;  %v501_v7 = vpop.f32.mrb[11].mxu1  ;;  %1032 = vmatpush3.bf16.msra.mxu0 %v532_v1  ;;  %1068 = vmatpush3.bf16.msra.mxu1 %v532_v1 }
 0x232   :  { %v533_v8 = vpack.c.bf16 %v501_v7, %v498_v4 }
 0x234   :  { %1033 = vmatprep.subr.bf16.mxu0 %v533_v8  ;;  %1061 = vmatprep.subr.bf16.mxu1 %v533_v8 }
 0x235   :  { %1034 = vmatpush3.bf16.msra.mxu0 %v533_v8  ;;  %1069 = vmatpush3.bf16.msra.mxu1 %v533_v8 }
 0x236   :  { %v1023_v9 = vpop.f32.mrb[12].mxu1  ;;  %1035 = vmatprep.subr.bf16.mxu0 %v534_v6  ;;  %1062 = vmatprep.subr.bf16.mxu1 %v534_v6 }
 0x237   :  { %v514_v10 = vpop.f32.mrb[13].mxu1 }
 0x238   :  { %v1024_v11 = vpop.f32.mrb[14].mxu1 }
 0x239   :  { %v536_v12 = vpack.c.bf16 %v1024_v11, %v1023_v9  ;;  %v517_v13 = vpop.f32.mrb[15].mxu1  ;;  %1036 = vmatpush3.bf16.msra.mxu0 %v534_v6  ;;  %1070 = vmatpush3.bf16.msra.mxu1 %v534_v6 }
 0x23a   :  { %v535_v21 = vpack.c.bf16 %v517_v13, %v514_v10 }
 0x23c   :  { %1037 = vmatprep.subr.bf16.mxu0 %v535_v21  ;;  %1063 = vmatprep.subr.bf16.mxu1 %v535_v21 }
 0x23d   :  { %1038 = vmatpush3.bf16.msra.mxu0 %v535_v21  ;;  %1071 = vmatpush3.bf16.msra.mxu1 %v535_v21 }
 0x23e   :  { %1039 = vmatprep.subr.bf16.mxu0 %v536_v12  ;;  %1064 = vmatprep.subr.bf16.mxu1 %v536_v12 }
 0x241   :  { %1040 = vmatpush3.bf16.msra.mxu0 %v536_v12  ;;  %1072 = vmatpush3.bf16.msra.mxu1 %v536_v12 }
 0x244   :  { %1042 = vmatmul.mubr.bf16.vlgmr.msra.gmra.mrb[16].mxu0 %v1406_v14  ;;  %1050 = vmatmul.mubr.bf16.vlgmr.msra.gmra.mrb[16].mxu1 %v1418_v18 }
 0x245   :  { %1045 = vmatprep.mubr.bf16.mxu0 %v1408_v15  ;;  %1053 = vmatprep.mubr.bf16.mxu1 %v1420_v19 }
 0x24c   :  { %1046 = vmatmul.mubr.bf16.gmra.mrb[20].mxu0 %v1412_v16  ;;  %1054 = vmatmul.mubr.bf16.gmra.mrb[20].mxu1 %v1424_v20 }
 0x317   :  { %v1043_v26 = vpop.f32.mrb[16].mxu0  ;;  %v1051_v27 = vpop.f32.mrb[16].mxu1 }
 0x318   :  { %v1461_v14 = vadd.f32 %v1043_v26, %v912_v25  ;;  %v1463_v15 = vadd.f32 %v1051_v27, %v912_v25  ;;  %v578_v18 = vpop.f32.mrb[17].mxu0  ;;  %v610_v19 = vpop.f32.mrb[17].mxu1 }
 0x319   :  { %v1044_v16 = vpop.f32.mrb[18].mxu0  ;;  %v1052_v28 = vpop.f32.mrb[18].mxu1  ;;  %v1465_v20 = vadd.f32 %v912_v25, %v578_v18  ;;  %v1475_v34 = vadd.f32 %v912_v25, %v610_v19 }
 0x31a   :  { %v1467_v29 = vadd.f32 %v1044_v16, %v912_v25  ;;  %v581_v30 = vpop.f32.mrb[19].mxu0  ;;  %v613_v31 = vpop.f32.mrb[19].mxu1  ;;  %v654_v32 = vsel %vm643_vm0, %v1463_v15, -1e+30  ;;  %v646_v33 = vsel %vm643_vm0, %v1461_v14, -1e+30  ;;  %v1477_v35 = vadd.f32 %v1052_v28, %v912_v25 }
 0x31b   :  { %680 = vmax.xlane.f32.xlu0 %v654_v32  ;;  %664 = vmax.xlane.f32.xlu1 %v646_v33  ;;  %v644_v37 = vsel %vm643_vm0, %v1465_v20, -1e+30  ;;  %v582_v44 = vadd.f32 %v912_v25, %v581_v30  ;;  %v614_v45 = vadd.f32 %v912_v25, %v613_v31  ;;  %v652_v47 = vsel %vm643_vm0, %v1475_v34, -1e+30 }
 0x31c   :  { %v647_v36 = vsel %vm643_vm0, %v1467_v29, -1e+30  ;;  %v655_v46 = vsel %vm643_vm0, %v1477_v35, -1e+30 }
 0x31d   :  { %v653_v52 = vsel %vm643_vm0, %v614_v45, -1e+30  ;;  %v645_v53 = vsel %vm643_vm0, %v582_v44, -1e+30 }
 0x31f   :  { %666 = vmax.xlane.f32.xlu1 %v647_v36  ;;  %660 = vmax.xlane.f32.xlu0 %v644_v37  ;;  %v1047_v38 = vpop.f32.mrb[20].mxu0  ;;  %v1055_v39 = vpop.f32.mrb[20].mxu1 }
 0x320   :  { %v594_v40 = vpop.f32.mrb[21].mxu0  ;;  %v626_v41 = vpop.f32.mrb[21].mxu1  ;;  %v603_v50 = vadd.f32 %v1047_v38, %v912_v25  ;;  %v1519_v63 = vadd.f32 %v1055_v39, %v912_v25 }
 0x321   :  { %v1048_v42 = vpop.f32.mrb[22].mxu0  ;;  %v1056_v43 = vpop.f32.mrb[22].mxu1  ;;  %v1499_v56 = vadd.f32 %v912_v25, %v594_v40  ;;  %v1503_v58 = vadd.f32 %v912_v25, %v626_v41 }
 0x322   :  { %v597_v48 = vpop.f32.mrb[23].mxu0  ;;  %v629_v49 = vpop.f32.mrb[23].mxu1  ;;  %v606_v51 = vadd.f32 %v1048_v42, %v912_v25  ;;  %v650_v55 = vsel %vm643_vm0, %v603_v50, -1e+30  ;;  %v1521_v0 = vadd.f32 %v1056_v43, %v912_v25  ;;  %v658_v2 = vsel %vm643_vm0, %v1519_v63, -1e+30 }
 0x323   :  { %682 = vmax.xlane.f32.xlu1 %v655_v46  ;;  %676 = vmax.xlane.f32.xlu0 %v652_v47  ;;  %v1501_v57 = vadd.f32 %v912_v25, %v597_v48  ;;  %v1505_v59 = vadd.f32 %v912_v25, %v629_v49  ;;  %v648_v60 = vsel %vm643_vm0, %v1499_v56, -1e+30  ;;  %v656_v62 = vsel %vm643_vm0, %v1503_v58, -1e+30 }
 0x324   :  { %v651_v54 = vsel %vm643_vm0, %v606_v51, -1e+30  ;;  %v659_v1 = vsel %vm643_vm0, %v1521_v0, -1e+30 }
 0x325   :  { %v649_v24 = vsel %vm643_vm0, %v1501_v57, -1e+30  ;;  %v657_v61 = vsel %vm643_vm0, %v1505_v59, -1e+30 }
 0x327   :  { %678 = vmax.xlane.f32.xlu1 %v653_v52  ;;  %662 = vmax.xlane.f32.xlu0 %v645_v53 }
 0x32b   :  { %674 = vmax.xlane.f32.xlu1 %v651_v54  ;;  %672 = vmax.xlane.f32.xlu0 %v650_v55 }
 0x32f   :  { %670 = vmax.xlane.f32.xlu1 %v649_v24  ;;  %668 = vmax.xlane.f32.xlu0 %v648_v60 }
 0x333   :  { %686 = vmax.xlane.f32.xlu1 %v657_v61  ;;  %684 = vmax.xlane.f32.xlu0 %v656_v62 }
 0x337   :  { %690 = vmax.xlane.f32.xlu1 %v659_v1  ;;  %688 = vmax.xlane.f32.xlu0 %v658_v2 }
 0x3a8   :  { %v681_v17 = vpop.xlane.xlu0 %680  ;;  %v665_v3 = vpop.xlane.xlu1 %664 }
 0x3a9   :  { %v1530_v4 = vsub.f32 %v1463_v15, %v681_v17  ;;  %v1533_v5 = vsub.f32 %v1461_v14, %v665_v3 }
 0x3ab   :  { %v712_v6 = vmul.f32 1.442695, %v1533_v5  ;;  %v728_v7 = vmul.f32 1.442695, %v1530_v4 }
 0x3ac   :  { %v667_v8 = vpop.xlane.xlu1 %666  ;;  %v661_v9 = vpop.xlane.xlu0 %660 }
 0x3ad   :  { %v1538_v10 = vsub.f32 %v1467_v29, %v667_v8  ;;  %v1541_v11 = vsub.f32 %v1465_v20, %v661_v9  ;;  %1106 = vpow2.f32 %v712_v6 }
 0x3ae   :  { %1108 = vpow2.f32 %v728_v7 }
 0x3af   :  { %v714_v12 = vmul.f32 1.442695, %v1538_v10  ;;  %v708_v13 = vmul.f32 1.442695, %v1541_v11 }
 0x3b0   :  { %v683_v21 = vpop.xlane.xlu1 %682  ;;  %v677_v22 = vpop.xlane.xlu0 %676 }
 0x3b1   :  { %1110 = vpow2.f32 %v714_v12  ;;  %v1546_v25 = vsub.f32 %v1477_v35, %v683_v21  ;;  %v1549_v26 = vsub.f32 %v1475_v34, %v677_v22 }
 0x3b2   :  { %1112 = vpow2.f32 %v708_v13 }
 0x3b3   :  { %v730_v27 = vmul.f32 1.442695, %v1546_v25  ;;  %v724_v14 = vmul.f32 1.442695, %v1549_v26 }
 0x3b4   :  { %v679_v15 = vpop.xlane.xlu1 %678  ;;  %v663_v18 = vpop.xlane.xlu0 %662 }
 0x3b5   :  { %1114 = vpow2.f32 %v730_v27  ;;  %v1553_v19 = vsub.f32 %v614_v45, %v679_v15  ;;  %v1555_v16 = vsub.f32 %v582_v44, %v663_v18 }
 0x3b6   :  { %1116 = vpow2.f32 %v724_v14 }
 0x3b7   :  { %v710_v28 = vmul.f32 1.442695, %v1555_v16  ;;  %v1107_v20 = vpop.eup %1106  ;;  %v726_v29 = vmul.f32 1.442695, %v1553_v19 }
 0x3b8   :  { %v675_v30 = vpop.xlane.xlu1 %674  ;;  %v673_v31 = vpop.xlane.xlu0 %672  ;;  %v742_v34 = vsel %vm643_vm0, %v1107_v20, 0.0 }
 0x3b9   :  { %v1559_v32 = vsub.f32 %v606_v51, %v675_v30  ;;  %v1561_v33 = vsub.f32 %v603_v50, %v673_v31  ;;  %v1109_v35 = vpop.eup %1108  ;;  %1118 = vpow2.f32 %v710_v28  ;;  %760 = vadd.xlane.f32.xlu0 %v742_v34 }
 0x3ba   :  { %1120 = vpow2.f32 %v726_v29  ;;  %v750_v44 = vsel %vm643_vm0, %v1109_v35, 0.0 }
 0x3bb   :  { %v1111_v36 = vpop.eup %1110  ;;  %v720_v37 = vmul.f32 1.442695, %v1561_v33  ;;  %v722_v38 = vmul.f32 1.442695, %v1559_v32 }
 0x3bc   :  { %v671_v39 = vpop.xlane.xlu1 %670  ;;  %v669_v40 = vpop.xlane.xlu0 %668  ;;  %v743_v41 = vsel %vm643_vm0, %v1111_v36, 0.0 }
 0x3bd   :  { %v1570_v42 = vsub.f32 %v1501_v57, %v671_v39  ;;  %v1573_v43 = vsub.f32 %v1499_v56, %v669_v40  ;;  %762 = vadd.xlane.f32.xlu1 %v743_v41  ;;  %v1113_v45 = vpop.eup %1112  ;;  %1122 = vpow2.f32 %v720_v37  ;;  %776 = vadd.xlane.f32.xlu0 %v750_v44 }
 0x3be   :  { %1124 = vpow2.f32 %v722_v38  ;;  %v740_v54 = vsel %vm643_vm0, %v1113_v45, 0.0 }
 0x3bf   :  { %v1115_v46 = vpop.eup %1114  ;;  %v716_v47 = vmul.f32 1.442695, %v1573_v43  ;;  %v718_v48 = vmul.f32 1.442695, %v1570_v42 }
 0x3c0   :  { %v687_v49 = vpop.xlane.xlu1 %686  ;;  %v685_v50 = vpop.xlane.xlu0 %684  ;;  %v751_v51 = vsel %vm643_vm0, %v1115_v46, 0.0 }
 0x3c1   :  { %v1582_v52 = vsub.f32 %v1505_v59, %v687_v49  ;;  %v1585_v53 = vsub.f32 %v1503_v58, %v685_v50  ;;  %778 = vadd.xlane.f32.xlu1 %v751_v51  ;;  %v1117_v55 = vpop.eup %1116  ;;  %1126 = vpow2.f32 %v716_v47  ;;  %756 = vadd.xlane.f32.xlu0 %v740_v54 }
 0x3c2   :  { %1128 = vpow2.f32 %v718_v48  ;;  %v748_v62 = vsel %vm643_vm0, %v1117_v55, 0.0 }
 0x3c3   :  { %v732_v56 = vmul.f32 1.442695, %v1585_v53  ;;  %v1119_v57 = vpop.eup %1118  ;;  %v734_v24 = vmul.f32 1.442695, %v1582_v52 }
 0x3c4   :  { %v691_v60 = vpop.xlane.xlu1 %690  ;;  %v689_v61 = vpop.xlane.xlu0 %688  ;;  %v741_v1 = vsel %vm643_vm0, %v1119_v57, 0.0 }
 0x3c5   :  { %v1592_v59 = vsub.f32 %v1521_v0, %v691_v60  ;;  %v1595_v58 = vsub.f32 %v1519_v63, %v689_v61  ;;  %v1121_v2 = vpop.eup %1120  ;;  %1130 = vpow2.f32 %v732_v56  ;;  %772 = vadd.xlane.f32.xlu0 %v748_v62  ;;  %758 = vadd.xlane.f32.xlu1 %v741_v1 }
 0x3c6   :  { %1132 = vpow2.f32 %v734_v24  ;;  %v749_v63 = vsel %vm643_vm0, %v1121_v2, 0.0 }
 0x3c7   :  { %v736_v17 = vmul.f32 1.442695, %v1595_v58  ;;  %v1123_v3 = vpop.eup %1122  ;;  %v738_v0 = vmul.f32 1.442695, %v1592_v59 }
 0x3c8   :  { %v746_v6 = vsel %vm643_vm0, %v1123_v3, 0.0  ;;  %v1125_v7 = vpop.eup %1124 }
 0x3c9   :  { %1134 = vpow2.f32 %v736_v17  ;;  %774 = vadd.xlane.f32.xlu1 %v749_v63  ;;  %768 = vadd.xlane.f32.xlu0 %v746_v6  ;;  %v747_v9 = vsel %vm643_vm0, %v1125_v7, 0.0 }
 0x3ca   :  { %1136 = vpow2.f32 %v738_v0 }
 0x3cb   :  { %v1127_v8 = vpop.eup %1126 }
 0x3cc   :  { %v744_v12 = vsel %vm643_vm0, %v1127_v8, 0.0  ;;  %v1129_v13 = vpop.eup %1128 }
 0x3cd   :  { %770 = vadd.xlane.f32.xlu1 %v747_v9  ;;  %764 = vadd.xlane.f32.xlu0 %v744_v12  ;;  %v745_v22 = vsel %vm643_vm0, %v1129_v13, 0.0 }
 0x3cf   :  { %v1131_v21 = vpop.eup %1130 }
 0x3d0   :  { %v752_v27 = vsel %vm643_vm0, %v1131_v21, 0.0  ;;  %v1133_v14 = vpop.eup %1132 }
 0x3d1   :  { %766 = vadd.xlane.f32.xlu1 %v745_v22  ;;  %780 = vadd.xlane.f32.xlu0 %v752_v27  ;;  %v753_v18 = vsel %vm643_vm0, %v1133_v14, 0.0 }
 0x3d3   :  { %v1135_v15 = vpop.eup %1134 }
 0x3d4   :  { %v754_v28 = vsel %vm643_vm0, %v1135_v15, 0.0  ;;  %v1137_v20 = vpop.eup %1136 }
 0x3d5   :  { %782 = vadd.xlane.f32.xlu1 %v753_v18  ;;  %784 = vadd.xlane.f32.xlu0 %v754_v28  ;;  %v755_v29 = vsel %vm643_vm0, %v1137_v20, 0.0 }
 0x3d9   :  { %786 = vadd.xlane.f32.xlu1 %v755_v29 }
 0x446   :  { %v761_v30 = vpop.xlane.xlu0 %760 }
 0x447   :  { %1138 = vlog2.f32 %v761_v30 }
 0x44a   :  { %v763_v31 = vpop.xlane.xlu1 %762  ;;  %v777_v34 = vpop.xlane.xlu0 %776 }
 0x44b   :  { %1140 = vlog2.f32 %v763_v31 }
 0x44c   :  { %1142 = vlog2.f32 %v777_v34 }
 0x44e   :  { %v779_v35 = vpop.xlane.xlu1 %778  ;;  %v757_v36 = vpop.xlane.xlu0 %756 }
 0x44f   :  { %1144 = vlog2.f32 %v779_v35 }
 0x450   :  { %1146 = vlog2.f32 %v757_v36 }
 0x451   :  { %v1139_v37 = vpop.eup %1138 }
 0x452   :  { %v793_v38 = vmul.f32 0.6931472, %v1139_v37  ;;  %v759_v39 = vpop.xlane.xlu1 %758  ;;  %v773_v40 = vpop.xlane.xlu0 %772 }
 0x453   :  { %1148 = vlog2.f32 %v759_v39 }
 0x454   :  { %v822_v44 = vsub.f32 %v1533_v5, %v793_v38  ;;  %1150 = vlog2.f32 %v773_v40 }
 0x455   :  { %v1141_v41 = vpop.eup %1140 }
 0x456   :  { %v1143_v45 = vpop.eup %1142  ;;  %v795_v46 = vmul.f32 0.6931472, %v1141_v41  ;;  %v838_v47 = vsel %vm643_vm0, %v822_v44, 0.0  ;;  %v775_v49 = vpop.xlane.xlu1 %774 }
 0x457   :  { %v809_v48 = vmul.f32 0.6931472, %v1143_v45  ;;  %v769_v50 = vpop.xlane.xlu0 %768  ;;  %854 = vst [vmem:[#allocation10 + $0x10] sm:$0xff] %v838_v47  ;;  %1152 = vlog2.f32 %v775_v49 }
 0x458   :  { %v823_v51 = vsub.f32 %v1538_v10, %v795_v46  ;;  %1154 = vlog2.f32 %v769_v50 }
 0x459   :  { %v1145_v54 = vpop.eup %1144  ;;  %v830_v55 = vsub.f32 %v1530_v4, %v809_v48 }
 0x45a   :  { %v1147_v56 = vpop.eup %1146  ;;  %v839_v5 = vsel %vm643_vm0, %v823_v51, 0.0  ;;  %v811_v57 = vmul.f32 0.6931472, %v1145_v54  ;;  %v771_v61 = vpop.xlane.xlu1 %770 }
 0x45b   :  { %855 = vst [vmem:[#allocation10 + $0x18] sm:$0xff] %v839_v5  ;;  %v846_v24 = vsel %vm643_vm0, %v830_v55, 0.0  ;;  %v789_v60 = vmul.f32 0.6931472, %v1147_v56  ;;  %v765_v62 = vpop.xlane.xlu0 %764  ;;  %1156 = vlog2.f32 %v771_v61 }
 0x45c   :  { %862 = vst [vmem:[#allocation10 + $0x50] sm:$0xff] %v846_v24  ;;  %v831_v10 = vsub.f32 %v1546_v25, %v811_v57  ;;  %1158 = vlog2.f32 %v765_v62 }
 0x45d   :  { %v820_v1 = vsub.f32 %v1541_v11, %v789_v60  ;;  %v1149_v4 = vpop.eup %1148 }
 0x45e   :  { %v847_v2 = vsel %vm643_vm0, %v831_v10, 0.0  ;;  %v1151_v17 = vpop.eup %1150  ;;  %v791_v0 = vmul.f32 0.6931472, %v1149_v4  ;;  %v767_v63 = vpop.xlane.xlu1 %766 }
 0x45f   :  { %863 = vst [vmem:[#allocation10 + $0x58] sm:$0xff] %v847_v2  ;;  %v836_v3 = vsel %vm643_vm0, %v820_v1, 0.0  ;;  %v781_v6 = vpop.xlane.xlu0 %780  ;;  %v805_v7 = vmul.f32 0.6931472, %v1151_v17  ;;  %1160 = vlog2.f32 %v767_v63 }
 0x460   :  { %852 = vst [vmem:[#allocation10] sm:$0xff] %v836_v3  ;;  %v821_v25 = vsub.f32 %v1555_v16, %v791_v0  ;;  %1162 = vlog2.f32 %v781_v6 }
 0x461   :  { %v1153_v11 = vpop.eup %1152  ;;  %v828_v8 = vsub.f32 %v1549_v26, %v805_v7 }
 0x462   :  { %v1155_v9 = vpop.eup %1154  ;;  %v837_v12 = vsel %vm643_vm0, %v821_v25, 0.0  ;;  %v807_v13 = vmul.f32 0.6931472, %v1153_v11  ;;  %v783_v21 = vpop.xlane.xlu1 %782 }
 0x463   :  { %v785_v22 = vpop.xlane.xlu0 %784  ;;  %853 = vst [vmem:[#allocation10 + $0x8] sm:$0xff] %v837_v12  ;;  %v844_v27 = vsel %vm643_vm0, %v828_v8, 0.0  ;;  %v801_v14 = vmul.f32 0.6931472, %v1155_v9  ;;  %1164 = vlog2.f32 %v783_v21 }
 0x464   :  { %860 = vst [vmem:[#allocation10 + $0x40] sm:$0xff] %v844_v27  ;;  %v829_v16 = vsub.f32 %v1553_v19, %v807_v13  ;;  %1166 = vlog2.f32 %v785_v22 }
 0x465   :  { %v1157_v15 = vpop.eup %1156  ;;  %v826_v26 = vsub.f32 %v1561_v33, %v801_v14 }
 0x466   :  { %v1159_v18 = vpop.eup %1158  ;;  %v845_v28 = vsel %vm643_vm0, %v829_v16, 0.0  ;;  %v803_v20 = vmul.f32 0.6931472, %v1157_v15  ;;  %v787_v29 = vpop.xlane.xlu1 %786 }
 0x467   :  { %861 = vst [vmem:[#allocation10 + $0x48] sm:$0xff] %v845_v28  ;;  %v842_v30 = vsel %vm643_vm0, %v826_v26, 0.0  ;;  %v797_v31 = vmul.f32 0.6931472, %v1159_v18  ;;  %1168 = vlog2.f32 %v787_v29 }
 0x468   :  { %858 = vst [vmem:[#allocation10 + $0x30] sm:$0xff] %v842_v30  ;;  %v827_v34 = vsub.f32 %v1559_v32, %v803_v20 }
 0x469   :  { %v1161_v19 = vpop.eup %1160  ;;  %v824_v35 = vsub.f32 %v1573_v43, %v797_v31 }
 0x46a   :  { %v1163_v36 = vpop.eup %1162  ;;  %v843_v33 = vsel %vm643_vm0, %v827_v34, 0.0  ;;  %v799_v37 = vmul.f32 0.6931472, %v1161_v19 }
 0x46b   :  { %859 = vst [vmem:[#allocation10 + $0x38] sm:$0xff] %v843_v33  ;;  %v840_v38 = vsel %vm643_vm0, %v824_v35, 0.0  ;;  %v813_v39 = vmul.f32 0.6931472, %v1163_v36 }
 0x46c   :  { %856 = vst [vmem:[#allocation10 + $0x20] sm:$0xff] %v840_v38  ;;  %v825_v40 = vsub.f32 %v1570_v42, %v799_v37 }
 0x46d   :  { %v1165_v41 = vpop.eup %1164  ;;  %v832_v44 = vsub.f32 %v1585_v53, %v813_v39 }
 0x46e   :  { %v1167_v32 = vpop.eup %1166  ;;  %v841_v43 = vsel %vm643_vm0, %v825_v40, 0.0  ;;  %v815_v45 = vmul.f32 0.6931472, %v1165_v41 }
 0x46f   :  { %857 = vst [vmem:[#allocation10 + $0x28] sm:$0xff] %v841_v43  ;;  %v848_v46 = vsel %vm643_vm0, %v832_v44, 0.0  ;;  %v817_v47 = vmul.f32 0.6931472, %v1167_v32 }
 0x470   :  { %864 = vst [vmem:[#allocation10 + $0x60] sm:$0xff] %v848_v46  ;;  %v833_v48 = vsub.f32 %v1582_v52, %v815_v45 }
 0x471   :  { %v1169_v49 = vpop.eup %1168  ;;  %v834_v50 = vsub.f32 %v1595_v58, %v817_v47 }
 0x472   :  { %v849_v42 = vsel %vm643_vm0, %v833_v48, 0.0  ;;  %v819_v53 = vmul.f32 0.6931472, %v1169_v49 }
 0x473   :  { %865 = vst [vmem:[#allocation10 + $0x68] sm:$0xff] %v849_v42  ;;  %v850_v51 = vsel %vm643_vm0, %v834_v50, 0.0 }
 0x474   :  { %866 = vst [vmem:[#allocation10 + $0x70] sm:$0xff] %v850_v51  ;;  %v835_v54 = vsub.f32 %v1592_v59, %v819_v53 }
 0x476   :  { %v851_v52 = vsel %vm643_vm0, %v835_v54, 0.0 }
 0x477   :  { %867 = vst [vmem:[#allocation10 + $0x78] sm:$0xff] %v851_v52 }
 0x478   :  { %1269 = shalt.err (!%p1266_p8)
}
 0x479   :  { %s1270_s28 = scalar_lea.hbm %s1690_s6, 2048 }
 0x47a   :  { %p1271_p9 = scmp.ne.s32.totalorder %s1690_s6, %s1270_s28  ;;  %p1274_p10 = scmp.lt.u32.totalorder %s1270_s28, %s1690_s6 }
 0x47c   :  { %p1276_p11 = pnand %p1274_p10, %p1271_p9 }
 0x47e   :  { %1279 = shalt.err (!%p1276_p11)
}
 0x47f   :  { %879 = dma.vmem_to_hbm [thread:$0]  %s874_s23, 2048, %s1690_s6, [#allocation4], %s1294_s3, %s1294_s3, %s1295_s9  }
 0x480   :  { %1286 = dma.done.wait [#allocation4], 2048  }
 0x481   :  { %1287 = vsyncadd [#allocation4], 4294965248 }
 0x482   :  { %883 = vsyncpa [#allocation3], 1 }
 0x483   :  { %884 = vsyncpa [#allocation6], 1 }
 0x484   :  { %885 = vsyncpa [#allocation9], 1 }
 0x485   :  { %886 = vsyncpa [#allocation4], 1 }

</bundles_post_ra>
